<compile_context>
chip_gen: v5e
topology: v5e:2x2
jax: 0.10.0
libtpu: 0.0.40
codegen_flags: <defaults>
</compile_context>

<pallas_src>
import functools

import jax
import jax.numpy as jnp
import numpy as np
from jax.experimental import pallas as pl
from jax.experimental.pallas import tpu as pltpu


@functools.lru_cache(maxsize=None)
def _roll_sign():
    """Pin pltpu.roll's rotation convention once.  Returns +1 if pltpu.roll
    follows the jnp.roll convention (roll(v, k)[i] == v[(i - k) % n]), -1 if it
    is the inverse.  Fails loudly otherwise (no silent fallback, per review)."""

    def probe(x_ref, o_ref):
        o_ref[...] = pltpu.roll(x_ref[...], shift=1, axis=1)

    x = jnp.broadcast_to(jax.lax.iota(jnp.float32, 128), (8, 128))
    y = pl.pallas_call(
        probe, out_shape=jax.ShapeDtypeStruct((8, 128), jnp.float32))(x)
    v = float(y[0, 1])
    if v == 0.0:
        return 1
    if v == 2.0:
        return -1
    raise RuntimeError(f"unexpected pltpu.roll convention (probe value {v})")


@functools.lru_cache(maxsize=None)
def _vmem_limit_bytes(default=32 * 1024 * 1024):
    """Per-generation scoped-VMEM limit (v7x has 64 MiB total vs 128 MiB on
    v5e/v6e), with a safe fallback if the hardware query is unavailable."""
    try:
        info = pltpu.get_tpu_info()
        for attr in ("vmem_capacity_bytes", "vmem_size_bytes", "vmem_bytes"):
            cap = getattr(info, attr, None)
            if cap:
                return int(min(cap * 3 // 4, 96 * 1024 * 1024))
    except Exception:
        pass
    return default


def _pick_batch_tile(N, Cin):
    """How many images to fold onto the sublane axis per grid step.

    Folding fills the (8,128) f32 / (16,128) bf16 vreg tiles even for tiny Cin
    and amortizes per-grid-step overhead.  The fold must divide N, and when the
    grid has more than one step the folded row count must be 8-aligned
    (BlockSpec divisibility); a full fold (block == whole array) is always
    legal.  At production batch sizes this still leaves many 'parallel' grid
    steps for v7x's two TensorCores."""
    cap = max(1, min(N, -(-16 // Cin)))          # target ~16 sublane rows/tile
    legal = [d for d in range(1, N + 1)
             if N % d == 0 and ((d * Cin) % 8 == 0 or d == N)]
    within = [d for d in legal if d <= cap]
    return max(within) if within else min(legal)


def _dsconv_kernel(x_ref, wdw_ref, wblk_ref, *rest, H, W, stride, roll_sign,
                   pointwise_on_vpu):
    if stride > 1:
        sel_ref, o_ref = rest
    else:
        (o_ref,) = rest

    HW = H * W
    x = x_ref[...]                                   # (btile*Cin, HW)
    # Tap math packed bf16 when the input is bf16 (v6e/v7x bf16 VALUs); f32
    # otherwise (v5e has no bf16 VPU).  Accumulation stays f32.
    xt = x if x.dtype == jnp.bfloat16 else x.astype(jnp.float32)
    wdw = wdw_ref[...].astype(xt.dtype)              # (btile*Cin, 9)
    R = xt.shape[0]

    # Border-validity masks from a lane iota (replaces a zero-pad halo); built
    # once per grid step, reused by all 8 non-center taps.
    lane = jax.lax.broadcasted_iota(jnp.int32, (R, HW), 1)
    col = jnp.bitwise_and(lane, W - 1) if (W & (W - 1)) == 0 else lane % W
    row_ok = {-1: lane >= W, 0: None, 1: lane < (H - 1) * W}
    col_ok = {-1: col >= 1, 0: None, 1: col <= W - 2}

    def shift_flat(v, s):
        # t[f] = v[(f + s) % HW] per sublane row; lane-axis XLU rotate.
        if s == 0:
            return v
        return pltpu.roll(v, shift=(-roll_sign * s) % HW, axis=1)

    # Depthwise 3x3: 9 rolled, masked, per-row-scaled VPU MACs on the packed
    # (btile*Cin, HW) tile.  Each sublane row is one (image, channel) pair, so
    # lane rolls never leak across images.
    acc = jnp.zeros((R, HW), jnp.float32)
    for ky in (-1, 0, 1):
        for kx in (-1, 0, 1):
            tap = shift_flat(xt, ky * W + kx)
            mask = row_ok[ky]
            if col_ok[kx] is not None:
                mask = col_ok[kx] if mask is None else jnp.logical_and(mask, col_ok[kx])
            if mask is not None:
                tap = jnp.where(mask, tap, jnp.zeros_like(tap))
            t = (ky + 1) * 3 + (kx + 1)
            acc = acc + (tap * wdw[:, t:t + 1]).astype(jnp.float32)
    acc = jnp.maximum(acc, 0.0)                      # ReLU after depthwise

    if stride > 1:
        # In-kernel decimation *before* the pointwise: 0/1 selection matmul on
        # the MXU keeps only the strided positions, so pointwise FLOPs and HBM
        # writeback shrink by stride**2 (bf16 operands, f32 accumulation).
        acc = jnp.dot(acc.astype(jnp.bfloat16), sel_ref[...].astype(jnp.bfloat16),
                      preferred_element_type=jnp.float32)

    if pointwise_on_vpu:
        # Tiny channel counts: the MXU would be <1% utilized, so run the
        # pointwise as K broadcast-MACs on the VPU in f32.
        wblk = wblk_ref[...].astype(jnp.float32)     # (M, K) block-diagonal
        y = jnp.zeros((wblk.shape[0], acc.shape[1]), jnp.float32)
        for k in range(wblk.shape[1]):
            y = y + wblk[:, k:k + 1] * acc[k:k + 1, :]
    else:
        # One lane-dense MXU matmul covering all folded images: bf16 operands
        # (single-pass MXU on all generations), f32 accumulation.
        y = jnp.dot(wblk_ref[...].astype(jnp.bfloat16), acc.astype(jnp.bfloat16),
                    preferred_element_type=jnp.float32)

    o_ref[...] = jnp.maximum(y, 0.0).astype(o_ref.dtype)   # ReLU, dense store


def dsconv_pallas(x_nchw, w_dw_oihw, w_pw_oihw, stride=1):
    """x: (N, Cin, H, W); w_dw: (Cin, 1, 3, 3); w_pw: (Cout, Cin, 1, 1)."""
    N, Cin, H, W = x_nchw.shape
    Cout = w_pw_oihw.shape[0]
    HW = H * W
    Ho = (H - 1) // stride + 1
    Wo = (W - 1) // stride + 1
    HoWo = Ho * Wo

    btile = _pick_batch_tile(N, Cin)
    grid_n = N // btile
    rows_in = btile * Cin
    rows_out = btile * Cout
    pointwise_on_vpu = (rows_in <= 8 and rows_out <= 16)

    # Free, contiguous reshapes only -- no transpose pass, no padding pass.
    x_flat = x_nchw.reshape(N * Cin, HW)
    wdw = jnp.tile(w_dw_oihw.reshape(Cin, 9), (btile, 1))        # (btile*Cin, 9)
    wpw = w_pw_oihw.reshape(Cout, Cin).astype(jnp.float32)
    # Block-diagonal pointwise weight: all btile folded images share one matmul.
    # TODO(synk): for very large btile, loop the pointwise per image instead
    # (block-diagonal weight grows as btile**2).
    wblk = jnp.kron(jnp.eye(btile, dtype=jnp.float32), wpw)      # (b*Cout, b*Cin)
    if not pointwise_on_vpu:
        wblk = wblk.astype(jnp.bfloat16)                         # bf16 MXU operand

    operands = [x_flat, wdw, wblk]
    in_specs = [
        pl.BlockSpec((rows_in, HW), lambda n: (n, 0)),
        pl.BlockSpec((rows_in, 9), lambda n: (0, 0)),
        pl.BlockSpec(wblk.shape, lambda n: (0, 0)),
    ]
    if stride > 1:
        # 0/1 selection matrix mapping flat (H,W) positions -> strided (Ho,Wo).
        sel_np = np.zeros((HW, HoWo), np.float32)
        src = (np.arange(Ho)[:, None] * stride * W
               + np.arange(Wo)[None, :] * stride).reshape(-1)
        sel_np[src, np.arange(HoWo)] = 1.0
        operands.append(jnp.asarray(sel_np, dtype=jnp.bfloat16))
        in_specs.append(pl.BlockSpec((HW, HoWo), lambda n: (0, 0)))

    kernel = functools.partial(
        _dsconv_kernel, H=H, W=W, stride=stride, roll_sign=_roll_sign(),
        pointwise_on_vpu=pointwise_on_vpu)

    out_flat = pl.pallas_call(
        kernel,
        out_shape=jax.ShapeDtypeStruct((N * Cout, HoWo), x_nchw.dtype),
        grid=(grid_n,),
        in_specs=in_specs,
        out_specs=pl.BlockSpec((rows_out, HoWo), lambda n: (n, 0)),
        compiler_params=pltpu.CompilerParams(
            # "parallel" lets v7x shard batch blocks across its two TensorCores
            # once N/btile >= 2 (no-op on single-TC v5e/v6e).
            dimension_semantics=("parallel",),
            vmem_limit_bytes=_vmem_limit_bytes(),
        ),
    )(*operands)

    return out_flat.reshape(N, Cout, Ho, Wo)


def dsconv_reference(x_nchw, w_dw_oihw, w_pw_oihw, stride=1):
    """Plain-JAX reference mirroring nn.Conv2d semantics (NCHW, cross-corr)."""
    dn = jax.lax.conv_dimension_numbers(x_nchw.shape, w_dw_oihw.shape,
                                        ("NCHW", "OIHW", "NCHW"))
    y = jax.lax.conv_general_dilated(
        x_nchw, w_dw_oihw, window_strides=(stride, stride),
        padding=((1, 1), (1, 1)), dimension_numbers=dn,
        feature_group_count=x_nchw.shape[1])
    y = jnp.maximum(y, 0.0)
    dn2 = jax.lax.conv_dimension_numbers(y.shape, w_pw_oihw.shape,
                                         ("NCHW", "OIHW", "NCHW"))
    z = jax.lax.conv_general_dilated(
        y, w_pw_oihw, window_strides=(1, 1), padding="VALID",
        dimension_numbers=dn2)
    return jnp.maximum(z, 0.0)


if __name__ == "__main__":
    key = jax.random.PRNGKey(0)

    # (name, N, Cin, Cout, H, W, dtype, stride, tol)
    #  - f32 stride-1 small channels: exact f32 path (VPU pointwise)
    #  - f32 stride-2: in-kernel strided decimation (bf16 select-matmul)
    #  - bf16 stride-1: bf16 tap-math path (per review, previously untested)
    #  - f32 larger channels: exercises the bf16 MXU pointwise path
    cases = [
        ("f32_s1_vpu_pw", 2, 4, 8, 16, 16, jnp.float32, 1, 1e-5),
        ("f32_s2_decim",  2, 4, 8, 16, 16, jnp.float32, 2, 2e-2),
        ("bf16_s1",       2, 4, 8, 16, 16, jnp.bfloat16, 1, 3e-2),
        ("f32_s1_mxu_pw", 2, 32, 64, 16, 16, jnp.float32, 1, 2e-2),
    ]
    for idx, (name, N, Cin, Cout, H, W, dtype, stride, tol) in enumerate(cases):
        kx, kd, kp = jax.random.split(jax.random.fold_in(key, idx), 3)
        x32 = jax.random.normal(kx, (N, Cin, H, W), jnp.float32)
        wd32 = jax.random.normal(kd, (Cin, 1, 3, 3), jnp.float32) * 0.2
        wp32 = jax.random.normal(kp, (Cout, Cin, 1, 1), jnp.float32) * 0.2
        x, wd, wp = x32.astype(dtype), wd32.astype(dtype), wp32.astype(dtype)

        out = jax.block_until_ready(dsconv_pallas(x, wd, wp, stride=stride))
        ref = dsconv_reference(x.astype(jnp.float32), wd.astype(jnp.float32),
                               wp.astype(jnp.float32), stride=stride)
        np.testing.assert_allclose(np.asarray(out, dtype=np.float32),
                                   np.asarray(ref), rtol=tol, atol=tol,
                                   err_msg=name)

    print("KERNEL_OK")
</pallas_src>

<mosaic_0001>
module attributes {stable_mosaic.version = 11 : i64} {
  func.func @probe(%arg0: memref<8x128xf32, #tpu.memory_space<vmem>>, %arg1: memref<8x128xf32, #tpu.memory_space<vmem>>) attributes {dimension_semantics = [], scalar_prefetch = 0 : i64, scratch_operands = 0 : i64, tpu.core_type = #tpu.core_type<tc>} {
    %c0 = arith.constant 0 : index
    %c0_0 = arith.constant 0 : index
    %0 = vector.load %arg0[%c0, %c0_0] : memref<8x128xf32, #tpu.memory_space<vmem>>, vector<8x128xf32>
    %c1_i32 = arith.constant 1 : i32
    %1 = tpu.dynamic_rotate %0 by %c1_i32 dim 1 : vector<8x128xf32>, i32 -> vector<8x128xf32>
    %c0_1 = arith.constant 0 : index
    %c0_2 = arith.constant 0 : index
    %2 = vector.load %arg1[%c0_1, %c0_2] : memref<8x128xf32, #tpu.memory_space<vmem>>, vector<8x128xf32>
    tpu.vector_store %arg1[%c0_1, %c0_2], %1 {strides = array<i32>} : memref<8x128xf32, #tpu.memory_space<vmem>>, vector<8x128xf32>,
    return
  }
}

</mosaic_0001>

<bundles_post_ra>
// kernel: tpu_custom_call.1
= control target key start
LH: loop header
LB: loop body
LE: loop exit
PB: predicated region body
PF: predicated region fallthrough
CT: control target
= control target key end

     0   :  { %6 = vsyncpa [#allocation3], 0  ;;  %s118_s0 = inlined_call_operand.hbm [shape: f32[8,128], index: 0, kind: input, shape index: {}]   ;;  %s119_s1 = inlined_call_operand.hbm [shape: f32[8,128], index: 1, kind: output, shape index: {}]  }
   0x1   :  { %7 = vsyncpa [#allocation4], 0  ;;  %s13_s8 = sshll.u32 %s118_s0, 4  ;;  %s99_s9 = smov [#allocation2]   ;;  %s14_s8 = int_to_ptr.hbm [resolvable:$true] %s13_s8 }
   0x2   :  { %s15_s10 = sshll.u32 %s99_s9, 4  ;;  %s16_s10 = int_to_ptr.vmem [resolvable:$true] %s15_s10 }
   0x3   :  { %18 = dma.hbm_to_vmem [thread:$0]  %s14_s8, 128, %s16_s10, [#allocation3]  }
   0x4   :  { %95 = dma.done.wait [#allocation3], 128  }
   0x5   :  { %96 = vsyncadd [#allocation3], 4294967168  ;;  %v23_v0 = vld [vmem:[#allocation2] sm:$0xff]  ;;  %s100_s11 = smov 1   ;;  %s101_s12 = smov [#allocation5]  }
   0x6   :  { %24 = vrot.lane.b32.xlu0 %v23_v0, %s100_s11  ;;  %s32_s13 = sshll.u32 %s101_s12, 4  ;;  %s34_s16 = sshll.u32 %s119_s1, 4  ;;  %s33_s13 = int_to_ptr.vmem [resolvable:$true] %s32_s13  ;;  %s35_s16 = int_to_ptr.hbm [resolvable:$true] %s34_s16 }
  0x78   :  { %v25_v1 = vpop.permute.xlu0 %24 }
  0x79   :  { %26 = vst [vmem:[#allocation5] sm:$0xff] %v25_v1 }
  0x7a   :  { %37 = dma.vmem_to_hbm [thread:$0]  %s33_s13, 128, %s35_s16, [#allocation4]  }
  0x7b   :  { %97 = dma.done.wait [#allocation4], 128  }
  0x7c   :  { %98 = vsyncadd [#allocation4], 4294967168 }
  0x7d   :  { %42 = vsyncpa [#allocation3], 1 }
  0x7e   :  { %43 = vsyncpa [#allocation4], 1 }

</bundles_post_ra>
